<compile_context>
chip_gen: v7x
topology: tpu7x:2x2x1
jax: 0.10.0
libtpu: 0.0.40
codegen_flags: <defaults>
</compile_context>

<pallas_src>
import functools

import jax
import jax.numpy as jnp
from jax import lax
from jax.experimental import pallas as pl
from jax.experimental.pallas import tpu as pltpu


def _round_up(x: int, m: int) -> int:
    return (x + m - 1) // m * m


# ----------------------------- Pallas kernel ---------------------------------
def _fused_mlp_kernel(*refs, context_len: int, tok_stride: int, num_linear: int):
    """One batch tile: one-hot folded-embedding matmul + all Linear(+ReLU) layers."""
    tok_ref = refs[0]
    w_refs = [refs[1 + 2 * i] for i in range(num_linear)]
    b_refs = [refs[2 + 2 * i] for i in range(num_linear)]
    o_ref = refs[1 + 2 * num_linear]

    bt = tok_ref.shape[0]                     # batch tile (multiple of 8)
    k_fold = w_refs[0].shape[0]               # S * num_tokens, padded to 128
    tok = tok_ref[...]                        # (bt, S) int32

    # One lane-full one-hot: column (s*num_tokens + token) is hot for position s.
    # Columns are disjoint per position, so an OR of S compares is exact.
    col_iota = lax.broadcasted_iota(jnp.int32, (bt, k_fold), 1)
    hit = col_iota == tok[:, 0:1]
    for s in range(1, context_len):           # static, tiny trip count
        hit = jnp.logical_or(hit, col_iota == tok[:, s:s + 1] + s * tok_stride)
    onehot = hit.astype(w_refs[0].dtype)      # bf16 0/1, exact

    # Layer 0: embedding gather + positional add + flatten + Linear, all in one dot.
    h = jnp.dot(onehot, w_refs[0][...],
                preferred_element_type=jnp.float32) + b_refs[0][...]

    # Remaining layers: activation never leaves vregs/VMEM between layers.
    for i in range(1, num_linear):
        h = jnp.maximum(h, 0.0)               # ReLU after every layer except the last
        h = jnp.dot(h.astype(w_refs[i].dtype), w_refs[i][...],
                    preferred_element_type=jnp.float32) + b_refs[i][...]

    o_ref[...] = h.astype(o_ref.dtype)        # (bt, out_pad) lane-dense store


# ------------------------------- wrapper --------------------------------------
def fused_mlp_forward(tokens_padded, weights, biases, *, num_tokens, batch_tile=256):
    """tokens_padded: (Bp, S) int32, Bp multiple of the batch tile.
    weights[0]: folded (round_up(S*num_tokens,128), H0_pad) bf16;
    weights[i>0]: (din_pad, dout_pad) bf16; biases[i]: (1, dout_pad) f32.
    Returns (Bp, dout_last_pad) f32."""
    bp, context_len = tokens_padded.shape
    num_linear = len(weights)
    out_pad = weights[-1].shape[1]
    k_fold = weights[0].shape[0]

    # Invariant of the first-layer fold (context_len == seq_len - 1, unpadded row layout).
    assert k_fold == _round_up(context_len * num_tokens, 128), (
        "folded first-layer weight does not match context_len/num_tokens")

    bt = bp if bp <= batch_tile else batch_tile
    assert bp % bt == 0 and bt % 8 == 0

    kernel = functools.partial(
        _fused_mlp_kernel,
        context_len=context_len, tok_stride=num_tokens, num_linear=num_linear)

    operands = [tokens_padded]
    in_specs = [pl.BlockSpec((bt, context_len), lambda i: (i, 0))]
    for w, b in zip(weights, biases):
        operands.extend([w, b])
        in_specs.append(pl.BlockSpec(w.shape, lambda i: (0, 0)))
        in_specs.append(pl.BlockSpec(b.shape, lambda i: (0, 0)))

    # Advisory cost for XLA scheduling of this single custom call.
    flops = 2 * bp * k_fold * weights[0].shape[1]
    for w in weights[1:]:
        flops += 2 * bp * w.shape[0] * w.shape[1]
    bytes_accessed = sum(int(x.size) * x.dtype.itemsize for x in operands)
    bytes_accessed += bp * out_pad * 4
    cost = pl.CostEstimate(flops=int(flops), transcendentals=0,
                           bytes_accessed=int(bytes_accessed))

    # Explicit VMEM budget: every operand is a (double-buffered) resident block.
    vmem_limit = int(min(max(2 * bytes_accessed + (2 << 20), 16 << 20), 64 << 20))

    return pl.pallas_call(
        kernel,
        out_shape=jax.ShapeDtypeStruct((bp, out_pad), jnp.float32),
        grid=(bp // bt,),
        in_specs=in_specs,
        out_specs=pl.BlockSpec((bt, out_pad), lambda i: (i, 0)),
        compiler_params=pltpu.CompilerParams(
            dimension_semantics=("parallel",),        # batch tiles independent (v7x 2 TCs)
            vmem_limit_bytes=vmem_limit),
        cost_estimate=cost,
    )(*operands)


# ------------------------------- MLP module -----------------------------------
class MLP:
    def __init__(self, num_tokens, output_dim, num_layers, embed_dim,
                 hidden_dim, seq_len=5, key=None):
        if key is None:
            key = jax.random.PRNGKey(0)
        n_linear = num_layers + 1
        keys = jax.random.split(key, 2 + 2 * n_linear)
        ki = iter(range(len(keys)))

        self.num_tokens = num_tokens
        self.embed_dim = embed_dim
        self.seq_len = seq_len
        self.output_dim = output_dim

        # Embedding tables, N(0, 1) like nn.Embedding (kept in f32 for the reference).
        self.token_embeddings = jax.random.normal(
            keys[next(ki)], (num_tokens, embed_dim), dtype=jnp.float32)
        self.position_embeddings = jax.random.normal(
            keys[next(ki)], (seq_len, embed_dim), dtype=jnp.float32)

        # Linear layers, U(-1/sqrt(din), 1/sqrt(din)) like nn.Linear; stored (in, out).
        S = seq_len - 1
        dims = [embed_dim * S] + [hidden_dim] * num_layers + [output_dim]
        self._w_orig, self._b_orig = [], []
        for din, dout in zip(dims[:-1], dims[1:]):
            bound = 1.0 / (din ** 0.5)
            self._w_orig.append(jax.random.uniform(
                keys[next(ki)], (din, dout), minval=-bound, maxval=bound,
                dtype=jnp.float32))
            self._b_orig.append(jax.random.uniform(
                keys[next(ki)], (dout,), minval=-bound, maxval=bound,
                dtype=jnp.float32))

        # ---- Fold embedding gather + positional add + flatten into layer 0 (f32 math):
        #   flatten(tok_emb + pos_emb) @ W0
        #     == onehot(b, s*V + tok[b,s]) @ W0_folded  +  sum_s pos[s] @ W0_s
        k_fold = _round_up(S * num_tokens, 128)
        h0 = dims[1]
        h0_pad = _round_up(h0, 128)
        w0, b0 = self._w_orig[0], self._b_orig[0]
        w0_folded = jnp.zeros((k_fold, h0_pad), jnp.float32)
        b0_folded = b0
        for s in range(S):
            w0_s = w0[s * embed_dim:(s + 1) * embed_dim, :]           # (E, h0)
            w0_folded = w0_folded.at[s * num_tokens:(s + 1) * num_tokens, :h0].set(
                self.token_embeddings @ w0_s)                         # (V, h0)
            b0_folded = b0_folded + self.position_embeddings[s] @ w0_s

        # bf16 weights (halves DMA bytes, native MXU path); biases stay f32.
        self._w_pad = [w0_folded.astype(jnp.bfloat16)]
        self._b_pad = [jnp.zeros((1, h0_pad), jnp.float32).at[0, :h0].set(b0_folded)]
        for idx in range(1, n_linear):
            din, dout = dims[idx], dims[idx + 1]
            din_p, dout_p = _round_up(din, 128), _round_up(dout, 128)
            w, b = self._w_orig[idx], self._b_orig[idx]
            self._w_pad.append(jnp.zeros((din_p, dout_p), jnp.float32)
                               .at[:din, :dout].set(w).astype(jnp.bfloat16))
            self._b_pad.append(jnp.zeros((1, dout_p), jnp.float32)
                               .at[0, :dout].set(b))

        self._jit_forward = jax.jit(self._forward)

    def _forward(self, inputs):
        batch, context_len = inputs.shape
        # Structural invariant of the module (and of the first-layer fold).
        assert context_len == self.seq_len - 1, (
            "first Linear expects embed_dim * (seq_len - 1) features")
        # NOTE: token ids must lie in [0, num_tokens); out-of-range ids select a wrong
        # (or zero) folded row instead of raising, same caveat as any one-hot gather.
        bp = _round_up(max(batch, 8), 8)
        if bp > 256:
            bp = _round_up(bp, 256)
        tok_p = jnp.zeros((bp, context_len), jnp.int32).at[:batch].set(
            inputs.astype(jnp.int32))
        out_p = fused_mlp_forward(tok_p, self._w_pad, self._b_pad,
                                  num_tokens=self.num_tokens)
        return out_p[:batch, :self.output_dim]

    def __call__(self, inputs):
        return self._jit_forward(inputs)

    # Plain-JAX f32 reference (module semantics), used for the correctness check.
    def reference_forward(self, inputs):
        batch, context_len = inputs.shape
        tok_e = jnp.take(self.token_embeddings, inputs, axis=0)
        pos_e = self.position_embeddings[:context_len][None, :, :]
        x = (tok_e + pos_e).reshape(batch, -1)
        n = len(self._w_orig)
        for i, (w, b) in enumerate(zip(self._w_orig, self._b_orig)):
            x = x @ w + b
            if i < n - 1:
                x = jnp.maximum(x, 0.0)
        return x


# --------------------------------- main ---------------------------------------
if __name__ == "__main__":
    num_tokens = 32
    output_dim = 8
    num_layers = 3
    embed_dim = 16
    hidden_dim = 32
    seq_len = 5
    batch = 2
    context_len = seq_len - 1  # first Linear expects embed_dim * (seq_len - 1)

    key = jax.random.PRNGKey(0)
    k_params, k_inputs = jax.random.split(key)

    model = MLP(num_tokens, output_dim, num_layers, embed_dim, hidden_dim,
                seq_len=seq_len, key=k_params)

    inputs = jax.random.randint(k_inputs, (batch, context_len), 0, num_tokens,
                                dtype=jnp.int32)

    out = model(inputs)
    jax.block_until_ready(out)
    assert out.shape == (batch, output_dim), out.shape
    assert out.dtype == jnp.float32

    # bf16 weights/activations in the kernel vs. f32 reference -> loosened tolerance.
    ref = model.reference_forward(inputs)
    assert jnp.allclose(out, ref, atol=5e-2, rtol=5e-2), (out, ref)

    print("KERNEL_OK")
</pallas_src>

<mosaic_0001>
module attributes {stable_mosaic.version = 11 : i64} {
  func.func @_fused_mlp_kernel(%arg0: i32, %arg1: memref<8x4xi32, #tpu.memory_space<vmem>>, %arg2: memref<128x128xbf16, #tpu.memory_space<vmem>>, %arg3: memref<1x128xf32, #tpu.memory_space<vmem>>, %arg4: memref<128x128xbf16, #tpu.memory_space<vmem>>, %arg5: memref<1x128xf32, #tpu.memory_space<vmem>>, %arg6: memref<128x128xbf16, #tpu.memory_space<vmem>>, %arg7: memref<1x128xf32, #tpu.memory_space<vmem>>, %arg8: memref<128x128xbf16, #tpu.memory_space<vmem>>, %arg9: memref<1x128xf32, #tpu.memory_space<vmem>>, %arg10: memref<8x128xf32, #tpu.memory_space<vmem>>) attributes {dimension_semantics = [#tpu.dimension_semantics<parallel>], iteration_bounds = array<i64: 1>, scalar_prefetch = 0 : i64, scratch_operands = 0 : i64, tpu.core_type = #tpu.core_type<tc>, window_params = [{transform_indices = @transform_0, window_bounds = array<i64: 8, 4>}, {pipeline_mode = #tpu.pipeline_mode<synchronous>, transform_indices = @transform_1, window_bounds = array<i64: 128, 128>}, {pipeline_mode = #tpu.pipeline_mode<synchronous>, transform_indices = @transform_2, window_bounds = array<i64: 1, 128>}, {pipeline_mode = #tpu.pipeline_mode<synchronous>, transform_indices = @transform_3, window_bounds = array<i64: 128, 128>}, {pipeline_mode = #tpu.pipeline_mode<synchronous>, transform_indices = @transform_4, window_bounds = array<i64: 1, 128>}, {pipeline_mode = #tpu.pipeline_mode<synchronous>, transform_indices = @transform_5, window_bounds = array<i64: 128, 128>}, {pipeline_mode = #tpu.pipeline_mode<synchronous>, transform_indices = @transform_6, window_bounds = array<i64: 1, 128>}, {pipeline_mode = #tpu.pipeline_mode<synchronous>, transform_indices = @transform_7, window_bounds = array<i64: 128, 128>}, {pipeline_mode = #tpu.pipeline_mode<synchronous>, transform_indices = @transform_8, window_bounds = array<i64: 1, 128>}, {transform_indices = @transform_9, window_bounds = array<i64: 8, 128>}]} {
    %c0 = arith.constant 0 : index
    %c0_0 = arith.constant 0 : index
    %0 = vector.load %arg1[%c0, %c0_0] : memref<8x4xi32, #tpu.memory_space<vmem>>, vector<8x4xi32>
    %1 = tpu.iota {dimensions = array<i32: 1>} : vector<8x128xi32>
    %2 = vector.extract_strided_slice %0 {offsets = [0, 0], sizes = [8, 1], strides = [1, 1]} : vector<8x4xi32> to vector<8x1xi32>
    %3 = vector.broadcast %2 : vector<8x1xi32> to vector<8x128xi32>
    %4 = arith.cmpi eq, %1, %3 : vector<8x128xi32>
    %5 = vector.extract_strided_slice %0 {offsets = [0, 1], sizes = [8, 1], strides = [1, 1]} : vector<8x4xi32> to vector<8x1xi32>
    %c32_i32 = arith.constant 32 : i32
    %6 = vector.broadcast %c32_i32 : i32 to vector<8x1xi32>
    %7 = arith.addi %5, %6 : vector<8x1xi32>
    %8 = vector.broadcast %7 : vector<8x1xi32> to vector<8x128xi32>
    %9 = arith.cmpi eq, %1, %8 : vector<8x128xi32>
    %10 = arith.ori %4, %9 : vector<8x128xi1>
    %11 = vector.extract_strided_slice %0 {offsets = [0, 2], sizes = [8, 1], strides = [1, 1]} : vector<8x4xi32> to vector<8x1xi32>
    %c64_i32 = arith.constant 64 : i32
    %12 = vector.broadcast %c64_i32 : i32 to vector<8x1xi32>
    %13 = arith.addi %11, %12 : vector<8x1xi32>
    %14 = vector.broadcast %13 : vector<8x1xi32> to vector<8x128xi32>
    %15 = arith.cmpi eq, %1, %14 : vector<8x128xi32>
    %16 = arith.ori %10, %15 : vector<8x128xi1>
    %17 = vector.extract_strided_slice %0 {offsets = [0, 3], sizes = [8, 1], strides = [1, 1]} : vector<8x4xi32> to vector<8x1xi32>
    %c96_i32 = arith.constant 96 : i32
    %18 = vector.broadcast %c96_i32 : i32 to vector<8x1xi32>
    %19 = arith.addi %17, %18 : vector<8x1xi32>
    %20 = vector.broadcast %19 : vector<8x1xi32> to vector<8x128xi32>
    %21 = arith.cmpi eq, %1, %20 : vector<8x128xi32>
    %22 = arith.ori %16, %21 : vector<8x128xi1>
    %23 = arith.extui %22 : vector<8x128xi1> to vector<8x128xi32>
    %24 = arith.sitofp %23 : vector<8x128xi32> to vector<8x128xf32>
    %25 = arith.truncf %24 : vector<8x128xf32> to vector<8x128xbf16>
    %c0_1 = arith.constant 0 : index
    %c0_2 = arith.constant 0 : index
    %26 = vector.load %arg2[%c0_1, %c0_2] : memref<128x128xbf16, #tpu.memory_space<vmem>>, vector<128x128xbf16>
    %cst = arith.constant dense<0.000000e+00> : vector<8x128xf32>
    %27 = tpu.matmul %25, %26, %cst {dimension_numbers = #tpu.dot_dimension_numbers<[1], [0], [0], [1], [0, 0, 1, 1], [], []>} : vector<8x128xbf16>, vector<128x128xbf16>, vector<8x128xf32> -> vector<8x128xf32>
    %c0_3 = arith.constant 0 : index
    %c0_4 = arith.constant 0 : index
    %28 = vector.load %arg3[%c0_3, %c0_4] : memref<1x128xf32, #tpu.memory_space<vmem>>, vector<1x128xf32>
    %29 = vector.broadcast %28 : vector<1x128xf32> to vector<8x128xf32>
    %30 = arith.addf %27, %29 : vector<8x128xf32>
    %cst_5 = arith.constant 0.000000e+00 : f32
    %31 = vector.broadcast %cst_5 : f32 to vector<8x128xf32>
    %32 = arith.maximumf %30, %31 : vector<8x128xf32>
    %33 = arith.truncf %32 : vector<8x128xf32> to vector<8x128xbf16>
    %c0_6 = arith.constant 0 : index
    %c0_7 = arith.constant 0 : index
    %34 = vector.load %arg4[%c0_6, %c0_7] : memref<128x128xbf16, #tpu.memory_space<vmem>>, vector<128x128xbf16>
    %cst_8 = arith.constant dense<0.000000e+00> : vector<8x128xf32>
    %35 = tpu.matmul %33, %34, %cst_8 {dimension_numbers = #tpu.dot_dimension_numbers<[1], [0], [0], [1], [0, 0, 1, 1], [], []>} : vector<8x128xbf16>, vector<128x128xbf16>, vector<8x128xf32> -> vector<8x128xf32>
    %c0_9 = arith.constant 0 : index
    %c0_10 = arith.constant 0 : index
    %36 = vector.load %arg5[%c0_9, %c0_10] : memref<1x128xf32, #tpu.memory_space<vmem>>, vector<1x128xf32>
    %37 = vector.broadcast %36 : vector<1x128xf32> to vector<8x128xf32>
    %38 = arith.addf %35, %37 : vector<8x128xf32>
    %cst_11 = arith.constant 0.000000e+00 : f32
    %39 = vector.broadcast %cst_11 : f32 to vector<8x128xf32>
    %40 = arith.maximumf %38, %39 : vector<8x128xf32>
    %41 = arith.truncf %40 : vector<8x128xf32> to vector<8x128xbf16>
    %c0_12 = arith.constant 0 : index
    %c0_13 = arith.constant 0 : index
    %42 = vector.load %arg6[%c0_12, %c0_13] : memref<128x128xbf16, #tpu.memory_space<vmem>>, vector<128x128xbf16>
    %cst_14 = arith.constant dense<0.000000e+00> : vector<8x128xf32>
    %43 = tpu.matmul %41, %42, %cst_14 {dimension_numbers = #tpu.dot_dimension_numbers<[1], [0], [0], [1], [0, 0, 1, 1], [], []>} : vector<8x128xbf16>, vector<128x128xbf16>, vector<8x128xf32> -> vector<8x128xf32>
    %c0_15 = arith.constant 0 : index
    %c0_16 = arith.constant 0 : index
    %44 = vector.load %arg7[%c0_15, %c0_16] : memref<1x128xf32, #tpu.memory_space<vmem>>, vector<1x128xf32>
    %45 = vector.broadcast %44 : vector<1x128xf32> to vector<8x128xf32>
    %46 = arith.addf %43, %45 : vector<8x128xf32>
    %cst_17 = arith.constant 0.000000e+00 : f32
    %47 = vector.broadcast %cst_17 : f32 to vector<8x128xf32>
    %48 = arith.maximumf %46, %47 : vector<8x128xf32>
    %49 = arith.truncf %48 : vector<8x128xf32> to vector<8x128xbf16>
    %c0_18 = arith.constant 0 : index
    %c0_19 = arith.constant 0 : index
    %50 = vector.load %arg8[%c0_18, %c0_19] : memref<128x128xbf16, #tpu.memory_space<vmem>>, vector<128x128xbf16>
    %cst_20 = arith.constant dense<0.000000e+00> : vector<8x128xf32>
    %51 = tpu.matmul %49, %50, %cst_20 {dimension_numbers = #tpu.dot_dimension_numbers<[1], [0], [0], [1], [0, 0, 1, 1], [], []>} : vector<8x128xbf16>, vector<128x128xbf16>, vector<8x128xf32> -> vector<8x128xf32>
    %c0_21 = arith.constant 0 : index
    %c0_22 = arith.constant 0 : index
    %52 = vector.load %arg9[%c0_21, %c0_22] : memref<1x128xf32, #tpu.memory_space<vmem>>, vector<1x128xf32>
    %53 = vector.broadcast %52 : vector<1x128xf32> to vector<8x128xf32>
    %54 = arith.addf %51, %53 : vector<8x128xf32>
    %c0_23 = arith.constant 0 : index
    %c0_24 = arith.constant 0 : index
    %55 = vector.load %arg10[%c0_23, %c0_24] : memref<8x128xf32, #tpu.memory_space<vmem>>, vector<8x128xf32>
    tpu.vector_store %arg10[%c0_23, %c0_24], %54 {strides = array<i32>} : memref<8x128xf32, #tpu.memory_space<vmem>>, vector<8x128xf32>,
    return
  }
  func.func @transform_0(%arg0: i32) -> (i32, i32) {
    %c0_i32 = arith.constant 0 : i32
    %c0_i32_0 = arith.constant 0 : i32
    return %arg0, %c0_i32 : i32, i32
  }
  func.func @transform_1(%arg0: i32) -> (i32, i32) {
    %c0_i32 = arith.constant 0 : i32
    %c0_i32_0 = arith.constant 0 : i32
    %c0_i32_1 = arith.constant 0 : i32
    return %c0_i32, %c0_i32_0 : i32, i32
  }
  func.func @transform_2(%arg0: i32) -> (i32, i32) {
    %c0_i32 = arith.constant 0 : i32
    %c0_i32_0 = arith.constant 0 : i32
    %c0_i32_1 = arith.constant 0 : i32
    return %c0_i32, %c0_i32_0 : i32, i32
  }
  func.func @transform_3(%arg0: i32) -> (i32, i32) {
    %c0_i32 = arith.constant 0 : i32
    %c0_i32_0 = arith.constant 0 : i32
    %c0_i32_1 = arith.constant 0 : i32
    return %c0_i32, %c0_i32_0 : i32, i32
  }
  func.func @transform_4(%arg0: i32) -> (i32, i32) {
    %c0_i32 = arith.constant 0 : i32
    %c0_i32_0 = arith.constant 0 : i32
    %c0_i32_1 = arith.constant 0 : i32
    return %c0_i32, %c0_i32_0 : i32, i32
  }
  func.func @transform_5(%arg0: i32) -> (i32, i32) {
    %c0_i32 = arith.constant 0 : i32
    %c0_i32_0 = arith.constant 0 : i32
    %c0_i32_1 = arith.constant 0 : i32
    return %c0_i32, %c0_i32_0 : i32, i32
  }
  func.func @transform_6(%arg0: i32) -> (i32, i32) {
    %c0_i32 = arith.constant 0 : i32
    %c0_i32_0 = arith.constant 0 : i32
    %c0_i32_1 = arith.constant 0 : i32
    return %c0_i32, %c0_i32_0 : i32, i32
  }
  func.func @transform_7(%arg0: i32) -> (i32, i32) {
    %c0_i32 = arith.constant 0 : i32
    %c0_i32_0 = arith.constant 0 : i32
    %c0_i32_1 = arith.constant 0 : i32
    return %c0_i32, %c0_i32_0 : i32, i32
  }
  func.func @transform_8(%arg0: i32) -> (i32, i32) {
    %c0_i32 = arith.constant 0 : i32
    %c0_i32_0 = arith.constant 0 : i32
    %c0_i32_1 = arith.constant 0 : i32
    return %c0_i32, %c0_i32_0 : i32, i32
  }
  func.func @transform_9(%arg0: i32) -> (i32, i32) {
    %c0_i32 = arith.constant 0 : i32
    %c0_i32_0 = arith.constant 0 : i32
    return %arg0, %c0_i32 : i32, i32
  }
}

</mosaic_0001>

<bundles_post_ra>
// kernel: _forward.1
= control target key start
LH: loop header
LB: loop body
LE: loop exit
PB: predicated region body
PF: predicated region fallthrough
CT: control target
= control target key end

     0   :  { %14 = vsyncpa [#allocation3], 0  ;;  %s1068_s0 = inlined_call_operand.vmem [shape: s32[8,4], index: 0, kind: input, shape index: {}]   ;;  %s1069_s1 = inlined_call_operand.hbm [shape: bf16[128,128], index: 1, kind: input, shape index: {}]   ;;  %s1070_s2 = inlined_call_operand.vmem [shape: f32[1,128], index: 2, kind: input, shape index: {}]   ;;  %s1071_s3 = inlined_call_operand.hbm [shape: bf16[128,128], index: 3, kind: input, shape index: {}]   ;;  %s1072_s4 = inlined_call_operand.vmem [shape: f32[1,128], index: 4, kind: input, shape index: {}]   ;;  %s1073_s5 = inlined_call_operand.hbm [shape: bf16[128,128], index: 5, kind: input, shape index: {}]   ;;  %s1074_s6 = inlined_call_operand.vmem [shape: f32[1,128], index: 6, kind: input, shape index: {}]   ;;  %s1075_s7 = inlined_call_operand.hbm [shape: bf16[128,128], index: 7, kind: input, shape index: {}]   ;;  %s1076_s8 = inlined_call_operand.vmem [shape: f32[1,128], index: 8, kind: input, shape index: {}]   ;;  %s1077_s9 = inlined_call_operand.vmem [shape: f32[8,128], index: 9, kind: output, shape index: {}]  }
   0x1   :  { %15 = vsyncpa [#allocation5], 0 }
   0x2   :  { %16 = vsyncpa [#allocation8], 0  ;;  %s873_s30 = smov [#allocation4]   ;;  %s874_s11 = smov [#allocation2]  }
   0x3   :  { %s38_s10 = sshll.u32 %s873_s30, 4  ;;  %s24_s12 = sshll.u32 %s874_s11, 4  ;;  %s39_s10 = int_to_ptr.vmem [resolvable:$true] %s38_s10  ;;  %s936_s12 = int_to_ptr.vmem [resolvable:$true] %s24_s12 }
   0x4   :  { %s779_s15 = scalar_lea.hbm %s1071_s3, 1024 }
   0x5   :  { %p780_p0 = scmp.ne.s32.totalorder %s1071_s3, %s779_s15  ;;  %p783_p1 = scmp.lt.u32.totalorder %s779_s15, %s1071_s3 }
   0x7   :  { %p785_p2 = pnand %p783_p1, %p780_p0 }
   0x9   :  { %788 = shalt.err (!%p785_p2)
}
   0xa   :  { %s789_s20 = scalar_lea.vmem %s39_s10, 1024  ;;  %p794_p4 = scmp.lt.s32.totalorder %s39_s10, %s39_s10 }
   0xb   :  { %p790_p3 = scmp.ne.s32.totalorder %s39_s10, %s789_s20  ;;  %p795_p5 = scmp.lt.s32.totalorder %s789_s20, %s789_s20 }
   0xd   :  { %p796_p6 = por %p795_p5, %p794_p4 }
   0xf   :  { %p797_p7 = pnand %p796_p6, %p790_p3 }
  0x11   :  { %800 = shalt.err (!%p797_p7)
}
  0x12   :  { %s875_s21 = smov 64   ;;  %s876_s22 = smov 4  }
  0x13   :  { %44 = dma.hbm_to_vmem [thread:$0]  %s1071_s3, 1024, %s39_s10, [#allocation5], %s875_s21, %s875_s21, %s876_s22  }
  0x14   :  { %s801_s27 = scalar_lea.hbm %s1069_s1, 1024 }
  0x15   :  { %p802_p8 = scmp.ne.s32.totalorder %s1069_s1, %s801_s27  ;;  %p805_p9 = scmp.lt.u32.totalorder %s801_s27, %s1069_s1 }
  0x17   :  { %p807_p10 = pnand %p805_p9, %p802_p8 }
  0x19   :  { %810 = shalt.err (!%p807_p10)
}
  0x1a   :  { %s811_s13 = scalar_lea.vmem %s936_s12, 1024  ;;  %p816_p12 = scmp.lt.s32.totalorder %s936_s12, %s936_s12 }
  0x1b   :  { %p812_p11 = scmp.ne.s32.totalorder %s936_s12, %s811_s13  ;;  %p817_p13 = scmp.lt.s32.totalorder %s811_s13, %s811_s13 }
  0x1d   :  { %p818_p0 = por %p817_p13, %p816_p12 }
  0x1f   :  { %p819_p1 = pnand %p818_p0, %p812_p11 }
  0x21   :  { %822 = shalt.err (!%p819_p1)
}
  0x22   :  { %30 = dma.hbm_to_vmem [thread:$0]  %s1069_s1, 1024, %s936_s12, [#allocation3], %s875_s21, %s875_s21, %s876_s22  }
  0x23   :  { %s877_s14 = smov [#allocation6]   ;;  %s878_s16 = smov [#allocation7]  }
  0x24   :  { %s52_s15 = sshll.u32 %s877_s14, 4  ;;  %s66_s17 = sshll.u32 %s878_s16, 4  ;;  %s53_s15 = int_to_ptr.vmem [resolvable:$true] %s52_s15  ;;  %s973_s17 = int_to_ptr.vmem [resolvable:$true] %s66_s17 }
  0x25   :  { %s823_s20 = scalar_lea.hbm %s1073_s5, 1024 }
  0x26   :  { %p824_p2 = scmp.ne.s32.totalorder %s1073_s5, %s823_s20  ;;  %p827_p3 = scmp.lt.u32.totalorder %s823_s20, %s1073_s5 }
  0x28   :  { %p829_p4 = pnand %p827_p3, %p824_p2 }
  0x2a   :  { %832 = shalt.err (!%p829_p4)
}
  0x2b   :  { %s833_s1 = scalar_lea.vmem %s53_s15, 1024  ;;  %p838_p6 = scmp.lt.s32.totalorder %s53_s15, %s53_s15 }
  0x2c   :  { %p834_p5 = scmp.ne.s32.totalorder %s53_s15, %s833_s1  ;;  %p839_p7 = scmp.lt.s32.totalorder %s833_s1, %s833_s1 }
  0x2e   :  { %p840_p8 = por %p839_p7, %p838_p6 }
  0x30   :  { %p841_p9 = pnand %p840_p8, %p834_p5 }
  0x32   :  { %844 = shalt.err (!%p841_p9)
}
  0x33   :  { %58 = dma.hbm_to_vmem [thread:$0]  %s1073_s5, 1024, %s53_s15, [#allocation5], %s875_s21, %s875_s21, %s876_s22  }
  0x34   :  { %s845_s30 = scalar_lea.hbm %s1075_s7, 1024 }
  0x35   :  { %p846_p10 = scmp.ne.s32.totalorder %s1075_s7, %s845_s30  ;;  %p849_p11 = scmp.lt.u32.totalorder %s845_s30, %s1075_s7 }
  0x37   :  { %p851_p12 = pnand %p849_p11, %p846_p10 }
  0x39   :  { %854 = shalt.err (!%p851_p12)
}
  0x3a   :  { %s855_s14 = scalar_lea.vmem %s973_s17, 1024  ;;  %p860_p0 = scmp.lt.s32.totalorder %s973_s17, %s973_s17 }
  0x3b   :  { %p856_p13 = scmp.ne.s32.totalorder %s973_s17, %s855_s14  ;;  %p861_p1 = scmp.lt.s32.totalorder %s855_s14, %s855_s14 }
  0x3d   :  { %p862_p2 = por %p861_p1, %p860_p0 }
  0x3f   :  { %p863_p3 = pnand %p862_p2, %p856_p13 }
  0x41   :  { %866 = shalt.err (!%p863_p3)
}
  0x42   :  { %72 = dma.hbm_to_vmem [thread:$0]  %s1075_s7, 1024, %s973_s17, [#allocation8], %s875_s21, %s875_s21, %s876_s22  }
  0x43   :  { %867 = dma.done.wait [#allocation3], 1024  }
  0x44   :  { %868 = vsyncadd [#allocation3], 4294966272 }
  0x45   :  { %869 = dma.done.wait [#allocation5], 2048  }
  0x46   :  { %870 = vsyncadd [#allocation5], 4294965248 }
  0x47   :  { %871 = dma.done.wait [#allocation8], 1024  }
  0x48   :  { %872 = vsyncadd [#allocation8], 4294966272  ;;  %v879_v0 = vmov 0   ;;  %v880_v1 = vmov 2   ;;  %v881_v2 = vmov 0.0   ;;  %v88_v3 = vld [vmem:[%s1068_s0] sm:$0xff]  ;;  %v89_v23 = vlaneseq }
  0x49   :  { %742 = vset.pattern.permute.xlu0 %v879_v0  ;;  %744 = vset.pattern.permute.xlu1 %v880_v1  ;;  %v101_v4 = vadd.s32 64, %v88_v3  ;;  %v747_v5 = vld [vmem:[#allocation2] sm:$0xff]   ;;  %v95_v6 = vadd.s32 32, %v88_v3  ;;  %v748_v7 = vld [vmem:[#allocation2 + $0x8] sm:$0xff]   ;;  %v107_v8 = vadd.s32 96, %v88_v3  ;;  %v882_v9 = vmov 1  }
  0x4a   :  { %649 = vmatprep.subr.bf16.mxu0 %v881_v2  ;;  %669 = vmatprep.subr.bf16.mxu1 %v881_v2  ;;  %v883_v10 = vmov 3   ;;  %v749_v11 = vld [vmem:[#allocation2 + $0x10] sm:$0xff]   ;;  %vm884_vm0 = vmmov 0   ;;  %v750_v12 = vld [vmem:[#allocation2 + $0x18] sm:$0xff]   ;;  %v755_v13 = vld [vmem:[#allocation4] sm:$0xff]   ;;  %v90_v25 = vand.u32 127, %v89_v23 }
  0x4b   :  { %92 = vperm.xlu0 %742, %v88_v3   ;;  %103 = vperm.xlu1 %744, %v101_v4   ;;  %v756_v14 = vld [vmem:[#allocation4 + $0x8] sm:$0xff]   ;;  %v751_v15 = vld [vmem:[#allocation2 + $0x20] sm:$0xff]   ;;  %v757_v16 = vld [vmem:[#allocation4 + $0x10] sm:$0xff]   ;;  %v885_v29 = vmov 1.0|1.0  }
  0x4c   :  { %650 = vmatpush3.bf16.msra.mxu0 %v747_v5  ;;  %665 = vmatprep.mubr.msk.bf16.mxu0 %vm884_vm0, %v881_v2  ;;  %v752_v17 = vld [vmem:[#allocation2 + $0x28] sm:$0xff]   ;;  %v758_v18 = vld [vmem:[#allocation4 + $0x18] sm:$0xff]   ;;  %v753_v19 = vld [vmem:[#allocation2 + $0x30] sm:$0xff]  }
  0x4d   :  { %651 = vmatprep.subr.bf16.mxu0 %v881_v2  ;;  %685 = vmatprep.mubr.msk.bf16.mxu1 %vm884_vm0, %v881_v2  ;;  %v759_v20 = vld [vmem:[#allocation4 + $0x20] sm:$0xff]   ;;  %v754_v21 = vld [vmem:[#allocation2 + $0x38] sm:$0xff]   ;;  %v760_v22 = vld [vmem:[#allocation4 + $0x28] sm:$0xff]  }
  0x4e   :  { %670 = vmatpush3.bf16.msra.mxu1 %v755_v13  ;;  %v761_v30 = vld [vmem:[#allocation4 + $0x30] sm:$0xff]   ;;  %v762_v31 = vld [vmem:[#allocation4 + $0x38] sm:$0xff]   ;;  %v763_v32 = vld [vmem:[#allocation6] sm:$0xff]  }
  0x4f   :  { %743 = vset.pattern.permute.xlu0 %v882_v9  ;;  %745 = vset.pattern.permute.xlu1 %v883_v10  ;;  %v764_v33 = vld [vmem:[#allocation6 + $0x8] sm:$0xff]   ;;  %v765_v34 = vld [vmem:[#allocation6 + $0x10] sm:$0xff]   ;;  %v766_v35 = vld [vmem:[#allocation6 + $0x18] sm:$0xff]  }
  0x50   :  { %97 = vperm.xlu0 %743, %v95_v6   ;;  %652 = vmatpush3.bf16.msra.mxu0 %v748_v7  ;;  %v767_v36 = vld [vmem:[#allocation6 + $0x20] sm:$0xff]   ;;  %v768_v37 = vld [vmem:[#allocation6 + $0x28] sm:$0xff]   ;;  %v769_v46 = vld [vmem:[#allocation6 + $0x30] sm:$0xff]  }
  0x51   :  { %109 = vperm.xlu1 %745, %v107_v8   ;;  %653 = vmatprep.subr.bf16.mxu0 %v881_v2  ;;  %v575_v38 = vld [vmem:[%s1070_s2] ss:$0 sm:$0xff]  ;;  %v770_v47 = vld [vmem:[#allocation6 + $0x38] sm:$0xff]   ;;  %v772_v49 = vld [vmem:[#allocation7 + $0x8] sm:$0xff]  }
  0x52   :  { %671 = vmatprep.subr.bf16.mxu1 %v881_v2  ;;  %v771_v48 = vld [vmem:[#allocation7] sm:$0xff]   ;;  %v773_v50 = vld [vmem:[#allocation7 + $0x10] sm:$0xff]   ;;  %v774_v51 = vld [vmem:[#allocation7 + $0x18] sm:$0xff]  }
  0x53   :  { %672 = vmatpush3.bf16.msra.mxu1 %v756_v14  ;;  %v775_v52 = vld [vmem:[#allocation7 + $0x20] sm:$0xff]   ;;  %v776_v53 = vld [vmem:[#allocation7 + $0x28] sm:$0xff]   ;;  %v777_v62 = vld [vmem:[#allocation7 + $0x30] sm:$0xff]  }
  0x54   :  { %654 = vmatpush3.bf16.msra.mxu0 %v749_v11  ;;  %746 = vset.pattern.permute.xlu0 %v883_v10  ;;  %v586_v54 = vld [vmem:[%s1072_s4] ss:$0 sm:$0xff]  ;;  %v778_v63 = vld [vmem:[#allocation7 + $0x38] sm:$0xff]  }
  0x55   :  { %655 = vmatprep.subr.bf16.mxu0 %v881_v2  ;;  %673 = vmatprep.subr.bf16.mxu1 %v881_v2  ;;  %v595_v0 = vld [vmem:[%s1074_s6] ss:$0 sm:$0xff] }
  0x56   :  { %v604_v9 = vld [vmem:[%s1076_s8] ss:$0 sm:$0xff] }
  0x57   :  { %674 = vmatpush3.bf16.msra.mxu1 %v757_v16 }
  0x58   :  { %656 = vmatpush3.bf16.msra.mxu0 %v750_v12  ;;  %675 = vmatprep.subr.bf16.mxu1 %v881_v2 }
  0x59   :  { %657 = vmatprep.subr.bf16.mxu0 %v881_v2 }
  0x5b   :  { %676 = vmatpush3.bf16.msra.mxu1 %v758_v18 }
  0x5c   :  { %658 = vmatpush3.bf16.msra.mxu0 %v751_v15  ;;  %677 = vmatprep.subr.bf16.mxu1 %v881_v2 }
  0x5d   :  { %659 = vmatprep.subr.bf16.mxu0 %v881_v2 }
  0x5f   :  { %678 = vmatpush3.bf16.msra.mxu1 %v759_v20 }
  0x60   :  { %660 = vmatpush3.bf16.msra.mxu0 %v752_v17  ;;  %679 = vmatprep.subr.bf16.mxu1 %v881_v2 }
  0x61   :  { %661 = vmatprep.subr.bf16.mxu0 %v881_v2 }
  0x63   :  { %680 = vmatpush3.bf16.msra.mxu1 %v760_v22 }
  0x64   :  { %662 = vmatpush3.bf16.msra.mxu0 %v753_v19  ;;  %681 = vmatprep.subr.bf16.mxu1 %v881_v2 }
  0x65   :  { %663 = vmatprep.subr.bf16.mxu0 %v881_v2 }
  0x67   :  { %682 = vmatpush3.bf16.msra.mxu1 %v761_v30 }
  0x68   :  { %664 = vmatpush3.bf16.msra.mxu0 %v754_v21  ;;  %683 = vmatprep.subr.bf16.mxu1 %v881_v2 }
  0x69   :  { %689 = vmatprep.subr.bf16.mxu0 %v881_v2 }
  0x6b   :  { %684 = vmatpush3.bf16.msra.mxu1 %v762_v31 }
  0x6c   :  { %709 = vmatprep.subr.bf16.mxu1 %v881_v2 }
  0xca   :  { %v93_v24 = vpop.permute.xlu0 %92  ;;  %v104_v26 = vpop.permute.xlu1 %103 }
  0xcb   :  { %vm94_vm1 = vcmp.eq.s32.totalorder %v90_v25, %v93_v24  ;;  %vm105_vm3 = vcmp.eq.s32.totalorder %v90_v25, %v104_v26 }
  0xcf   :  { %v98_v27 = vpop.permute.xlu0 %97 }
  0xd0   :  { %vm99_vm2 = vcmp.eq.s32.totalorder %v90_v25, %v98_v27  ;;  %v110_v28 = vpop.permute.xlu1 %109 }
  0xd1   :  { %vm100_vm4 = vmor %vm94_vm1, %vm99_vm2  ;;  %vm111_vm6 = vcmp.eq.s32.totalorder %v90_v25, %v110_v28 }
  0xd2   :  { %vm106_vm5 = vmor %vm100_vm4, %vm105_vm3 }
  0xd3   :  { %vm112_vm7 = vmor %vm106_vm5, %vm111_vm6 }
  0xd4   :  { %vm584_vm8 = vmpackc.low %vm112_vm7, %vm112_vm7 }
  0xd5   :  { %666 = vmatmul.mubr.msk.bf16.vlgmr.msra.gmra.mrb[0].mxu0 %vm584_vm8, %v885_v29 }
  0xd6   :  { %705 = vmatprep.mubr.msk.bf16.mxu0 %vm884_vm0, %v881_v2  ;;  %690 = vmatpush3.bf16.msra.mxu0 %v763_v32 }
  0xd7   :  { %691 = vmatprep.subr.bf16.mxu0 %v881_v2 }
  0xda   :  { %692 = vmatpush3.bf16.msra.mxu0 %v764_v33 }
  0xdb   :  { %693 = vmatprep.subr.bf16.mxu0 %v881_v2 }
  0xde   :  { %694 = vmatpush3.bf16.msra.mxu0 %v765_v34 }
  0xdf   :  { %695 = vmatprep.subr.bf16.mxu0 %v881_v2 }
  0xe2   :  { %696 = vmatpush3.bf16.msra.mxu0 %v766_v35 }
  0xe3   :  { %697 = vmatprep.subr.bf16.mxu0 %v881_v2 }
  0xe6   :  { %698 = vmatpush3.bf16.msra.mxu0 %v767_v36 }
  0xe7   :  { %699 = vmatprep.subr.bf16.mxu0 %v881_v2 }
  0xea   :  { %700 = vmatpush3.bf16.msra.mxu0 %v768_v37 }
  0xeb   :  { %701 = vmatprep.subr.bf16.mxu0 %v881_v2 }
  0xee   :  { %702 = vmatpush3.bf16.msra.mxu0 %v769_v46 }
  0xef   :  { %703 = vmatprep.subr.bf16.mxu0 %v881_v2 }
  0xf2   :  { %704 = vmatpush3.bf16.msra.mxu0 %v770_v47 }
 0x1a8   :  { %v221_v39 = vpop.f32.mrb[0].mxu0 }
 0x1a9   :  { %v222_v40 = vadd.f32 %v575_v38, %v221_v39  ;;  %v667_v41 = vpop.f32.mrb[1].mxu0 }
 0x1aa   :  { %v224_v42 = vpop.f32.mrb[2].mxu0 }
 0x1ab   :  { %v227_v43 = vmax.f32 %v222_v40, 0.0  ;;  %v668_v44 = vpop.f32.mrb[3].mxu0 }
 0x1ad   :  { %v228_v45 = vpack.c.bf16 %v227_v43, %v227_v43 }
 0x1af   :  { %686 = vmatmul.mubr.bf16.vlgmr.msra.gmra.mrb[0].mxu1 %v228_v45 }
 0x1b0   :  { %725 = vmatprep.mubr.msk.bf16.mxu1 %vm884_vm0, %v881_v2  ;;  %710 = vmatpush3.bf16.msra.mxu1 %v771_v48 }
 0x1b1   :  { %711 = vmatprep.subr.bf16.mxu1 %v881_v2 }
 0x1b4   :  { %712 = vmatpush3.bf16.msra.mxu1 %v772_v49 }
 0x1b5   :  { %713 = vmatprep.subr.bf16.mxu1 %v881_v2 }
 0x1b8   :  { %714 = vmatpush3.bf16.msra.mxu1 %v773_v50 }
 0x1b9   :  { %715 = vmatprep.subr.bf16.mxu1 %v881_v2 }
 0x1bc   :  { %716 = vmatpush3.bf16.msra.mxu1 %v774_v51 }
 0x1bd   :  { %717 = vmatprep.subr.bf16.mxu1 %v881_v2 }
 0x1c0   :  { %718 = vmatpush3.bf16.msra.mxu1 %v775_v52 }
 0x1c1   :  { %719 = vmatprep.subr.bf16.mxu1 %v881_v2 }
 0x1c4   :  { %720 = vmatpush3.bf16.msra.mxu1 %v776_v53 }
 0x1c5   :  { %721 = vmatprep.subr.bf16.mxu1 %v881_v2 }
 0x1c8   :  { %722 = vmatpush3.bf16.msra.mxu1 %v777_v62 }
 0x1c9   :  { %723 = vmatprep.subr.bf16.mxu1 %v881_v2 }
 0x1cc   :  { %724 = vmatpush3.bf16.msra.mxu1 %v778_v63 }
 0x282   :  { %v334_v55 = vpop.f32.mrb[0].mxu1 }
 0x283   :  { %v335_v56 = vadd.f32 %v586_v54, %v334_v55  ;;  %v687_v57 = vpop.f32.mrb[1].mxu1 }
 0x284   :  { %v337_v58 = vpop.f32.mrb[2].mxu1 }
 0x285   :  { %v340_v59 = vmax.f32 %v335_v56, 0.0  ;;  %v688_v60 = vpop.f32.mrb[3].mxu1 }
 0x287   :  { %v341_v61 = vpack.c.bf16 %v340_v59, %v340_v59 }
 0x289   :  { %706 = vmatmul.mubr.bf16.vlgmr.msra.gmra.mrb[4].mxu0 %v341_v61 }
 0x35c   :  { %v447_v1 = vpop.f32.mrb[4].mxu0 }
 0x35d   :  { %v448_v3 = vadd.f32 %v595_v0, %v447_v1  ;;  %v707_v4 = vpop.f32.mrb[5].mxu0 }
 0x35e   :  { %v450_v5 = vpop.f32.mrb[6].mxu0 }
 0x35f   :  { %v453_v6 = vmax.f32 %v448_v3, 0.0  ;;  %v708_v7 = vpop.f32.mrb[7].mxu0 }
 0x361   :  { %v454_v8 = vpack.c.bf16 %v453_v6, %v453_v6 }
 0x363   :  { %726 = vmatmul.mubr.bf16.vlgmr.msra.gmra.mrb[4].mxu1 %v454_v8 }
 0x436   :  { %v560_v10 = vpop.f32.mrb[4].mxu1 }
 0x437   :  { %v561_v2 = vadd.f32 %v604_v9, %v560_v10  ;;  %v727_v11 = vpop.f32.mrb[5].mxu1 }
 0x438   :  { %v563_v12 = vpop.f32.mrb[6].mxu1 }
 0x439   :  { %566 = vst [vmem:[%s1077_s9] sm:$0xff] %v561_v2  ;;  %v728_v13 = vpop.f32.mrb[7].mxu1 }
 0x43a   :  { %571 = vsyncpa [#allocation3], 1 }
 0x43b   :  { %572 = vsyncpa [#allocation5], 1 }
 0x43c   :  { %573 = vsyncpa [#allocation8], 1 }

</bundles_post_ra>
